<compile_context>
chip_gen: v6e
topology: v6e:2x2x1
jax: 0.10.0
libtpu: 0.0.40
codegen_flags: <defaults>
</compile_context>

<pallas_src>
import functools
import math

import jax
import jax.numpy as jnp
from jax.experimental import pallas as pl
from jax.experimental.pallas import tpu as pltpu

_SQRT3 = math.sqrt(3.0)
_SQRT5 = math.sqrt(5.0)
_C30 = math.sqrt(5.0 / 6.0)
_C32 = math.sqrt(3.0 / 8.0)


def _sh_rows(x, y, z, ls):
    """Real spherical harmonics for degrees in `ls`, as a list of arrays shaped like x.

    Polynomials follow e3nn's generated forms ('norm'-normalized), then each degree
    block is scaled by sqrt(2l+1) ('component' normalization).
    """
    y2 = y * y
    x2z2 = x * x + z * z

    sh = {0: [jnp.ones_like(x)], 1: [x, y, z]}

    sh_2_0 = _SQRT3 * x * z
    sh_2_1 = _SQRT3 * x * y
    sh_2_2 = y2 - 0.5 * x2z2
    sh_2_3 = _SQRT3 * y * z
    sh_2_4 = 0.5 * _SQRT3 * (z * z - x * x)
    sh[2] = [sh_2_0, sh_2_1, sh_2_2, sh_2_3, sh_2_4]

    sh[3] = [
        _C30 * (sh_2_0 * z + sh_2_4 * x),
        _SQRT5 * sh_2_0 * y,
        _C32 * (4.0 * y2 - x2z2) * x,
        0.5 * y * (2.0 * y2 - 3.0 * x2z2),
        _C32 * z * (4.0 * y2 - x2z2),
        _SQRT5 * sh_2_4 * y,
        _C30 * (sh_2_4 * z - sh_2_0 * x),
    ]

    rows = []
    for l in ls:
        scale = math.sqrt(2 * l + 1)  # component normalization
        rows += [scale * r for r in sh[l]]
    return rows


def _sh_kernel(v_ref, out_ref, *, ls, normalize):
    # v_ref: (3, TB), out_ref: (dim, TB) -- batch on lanes (lane-dense layout).
    v = v_ref[...].astype(jnp.float32)
    x = v[0:1, :]
    y = v[1:2, :]
    z = v[2:3, :]
    if normalize:
        # torch.nn.functional.normalize(v, dim=1): v / max(||v||, 1e-12)
        n2 = x * x + y * y + z * z
        inv = jax.lax.rsqrt(jnp.maximum(n2, 1e-24))  # == 1 / max(||v||, 1e-12)
        x = x * inv
        y = y * inv
        z = z * inv
    rows = _sh_rows(x, y, z, ls)
    # Write each SH component directly into its output row: full-lane-width stores,
    # no cross-lane concatenation/shuffles.
    for r, row in enumerate(rows):
        out_ref[r : r + 1, :] = row.astype(out_ref.dtype)


def spherical_harmonics_t(vectors_t, ls, normalize=True, *, block_batch=32768):
    """Lane-dense core: vectors_t of shape (3, batch) -> output of shape (dim, batch)."""
    assert vectors_t.ndim == 2 and vectors_t.shape[0] == 3, vectors_t.shape
    ls = list(ls)
    assert ls == sorted(set(ls)), "ls must be sorted and unique"
    assert all(0 <= l <= 3 for l in ls), "this kernel hardcodes degrees l <= 3"
    # TODO(synk): the generic SegmentedPolynomial / 'uniform_1d' CUDA path supports
    # arbitrary l via segmented CG contractions; here we evaluate closed-form
    # polynomials for l <= 3 instead.
    assert block_batch % 128 == 0, "block_batch must be a multiple of 128"

    b = vectors_t.shape[1]
    dim = sum(2 * l + 1 for l in ls)

    # If the whole batch fits in one block, take it whole (block == full array extent,
    # so no (8,128) divisibility requirement and a single grid step).  Otherwise use a
    # large lane-dense tile and let Pallas mask the ragged tail block -- no jnp.pad of
    # the input nor slicing of the output is needed.
    tb = b if b <= block_batch else block_batch
    grid = (pl.cdiv(b, tb),)

    kernel = functools.partial(_sh_kernel, ls=tuple(ls), normalize=normalize)

    # VMEM footprint per block set: (3 + dim) * tb * 4 bytes; with the default
    # tb=32768 and dim=16 that is ~2.5 MiB (~5 MiB double-buffered), well under the
    # default scoped VMEM limits on v5e / v6e / v7x, so no vmem_limit override needed.
    return pl.pallas_call(
        kernel,
        out_shape=jax.ShapeDtypeStruct((dim, b), vectors_t.dtype),
        grid=grid,
        in_specs=[pl.BlockSpec((3, tb), lambda i: (0, i))],
        out_specs=pl.BlockSpec((dim, tb), lambda i: (0, i)),
        compiler_params=pltpu.CompilerParams(dimension_semantics=("parallel",)),
    )(vectors_t)


def spherical_harmonics(vectors, ls, normalize=True, *, block_batch=32768):
    """Module-compatible wrapper: (batch, 3) -> (batch, dim), matching
    cuet.SphericalHarmonics(ls, normalize)(vectors)."""
    assert vectors.ndim == 2 and vectors.shape[1] == 3, vectors.shape
    out_t = spherical_harmonics_t(vectors.T, ls, normalize, block_batch=block_batch)
    return out_t.T


def _reference(vectors, ls, normalize):
    """Pure-JAX elementwise reference (same polynomials, independent of the Pallas
    mechanics: layout, tiling, edge masking, row writes)."""
    v = jnp.asarray(vectors, jnp.float32)
    if normalize:
        n = jnp.sqrt(jnp.sum(v * v, axis=1, keepdims=True))
        v = v / jnp.maximum(n, 1e-12)
    x, y, z = v[:, 0:1], v[:, 1:2], v[:, 2:3]
    rows = _sh_rows(x, y, z, list(ls))  # each (batch, 1)
    return jnp.concatenate(rows, axis=1)


if __name__ == "__main__":
    key = jax.random.PRNGKey(0)
    k1, k2 = jax.random.split(key)

    ls = [0, 1, 2, 3]  # output dim = 1 + 3 + 5 + 7 = 16
    dim = sum(2 * l + 1 for l in ls)

    # --- Test 1: small batch, single-block path, normalize=True -------------------
    batch = 100
    vectors = jax.random.normal(k1, (batch, 3), dtype=jnp.float32)
    out = jax.block_until_ready(spherical_harmonics(vectors, ls, normalize=True))
    assert out.shape == (batch, dim), out.shape
    assert out.dtype == vectors.dtype

    ref = _reference(vectors, ls, normalize=True)
    assert bool(jnp.allclose(out.astype(jnp.float32), ref, atol=1e-4, rtol=1e-4)), (
        "elementwise mismatch vs reference (test 1)"
    )

    # Sanity: with normalize=True and 'component' normalization, ||Y_l(v)||^2 = 2l+1.
    off = 0
    for l in ls:
        blk = out[:, off : off + 2 * l + 1]
        nrm2 = jnp.sum(blk.astype(jnp.float32) ** 2, axis=1)
        assert bool(jnp.all(jnp.abs(nrm2 - (2 * l + 1)) < 1e-3)), f"norm check failed at l={l}"
        off += 2 * l + 1
    # NOTE: norm checks cannot catch sign / m-ordering / axis-convention mismatches;
    # those require an external e3nn/cuet comparison which is out of scope in-script.

    # --- Test 2: multi-block grid with ragged tail (edge masking), normalize=False --
    batch2 = 300
    vectors2 = 2.5 * jax.random.normal(k2, (batch2, 3), dtype=jnp.float32)
    out2 = jax.block_until_ready(
        spherical_harmonics(vectors2, ls, normalize=False, block_batch=128)
    )
    assert out2.shape == (batch2, dim), out2.shape
    ref2 = _reference(vectors2, ls, normalize=False)
    assert bool(jnp.allclose(out2.astype(jnp.float32), ref2, atol=1e-3, rtol=1e-4)), (
        "elementwise mismatch vs reference (test 2, ragged grid)"
    )

    print("KERNEL_OK")
</pallas_src>

<mosaic_0001>
module attributes {stable_mosaic.version = 11 : i64} {
  func.func @_sh_kernel(%arg0: i32, %arg1: memref<3x100xf32, #tpu.memory_space<vmem>>, %arg2: memref<16x100xf32, #tpu.memory_space<vmem>>) attributes {dimension_semantics = [#tpu.dimension_semantics<parallel>], iteration_bounds = array<i64: 1>, scalar_prefetch = 0 : i64, scratch_operands = 0 : i64, tpu.core_type = #tpu.core_type<tc>, window_params = [{transform_indices = @transform_0, window_bounds = array<i64: 3, 100>}, {transform_indices = @transform_1, window_bounds = array<i64: 16, 100>}]} {
    %c0 = arith.constant 0 : index
    %c0_0 = arith.constant 0 : index
    %0 = vector.load %arg1[%c0, %c0_0] : memref<3x100xf32, #tpu.memory_space<vmem>>, vector<3x100xf32>
    %1 = vector.extract_strided_slice %0 {offsets = [0, 0], sizes = [1, 100], strides = [1, 1]} : vector<3x100xf32> to vector<1x100xf32>
    %2 = vector.extract_strided_slice %0 {offsets = [1, 0], sizes = [1, 100], strides = [1, 1]} : vector<3x100xf32> to vector<1x100xf32>
    %3 = vector.extract_strided_slice %0 {offsets = [2, 0], sizes = [1, 100], strides = [1, 1]} : vector<3x100xf32> to vector<1x100xf32>
    %4 = arith.mulf %1, %1 : vector<1x100xf32>
    %5 = arith.mulf %2, %2 : vector<1x100xf32>
    %6 = arith.addf %4, %5 : vector<1x100xf32>
    %7 = arith.mulf %3, %3 : vector<1x100xf32>
    %8 = arith.addf %6, %7 : vector<1x100xf32>
    %cst = arith.constant 1.000000e-24 : f32
    %9 = vector.broadcast %cst : f32 to vector<1x100xf32>
    %10 = arith.maximumf %8, %9 : vector<1x100xf32>
    %11 = math.rsqrt %10 : vector<1x100xf32>
    %12 = arith.mulf %1, %11 : vector<1x100xf32>
    %13 = arith.mulf %2, %11 : vector<1x100xf32>
    %14 = arith.mulf %3, %11 : vector<1x100xf32>
    %15 = arith.mulf %13, %13 : vector<1x100xf32>
    %16 = arith.mulf %12, %12 : vector<1x100xf32>
    %17 = arith.mulf %14, %14 : vector<1x100xf32>
    %18 = arith.addf %16, %17 : vector<1x100xf32>
    %cst_1 = arith.constant 1.000000e+00 : f32
    %19 = vector.broadcast %cst_1 : f32 to vector<1x100xf32>
    %cst_2 = arith.constant 1.73205078 : f32
    %20 = vector.broadcast %cst_2 : f32 to vector<1x100xf32>
    %21 = arith.mulf %20, %12 : vector<1x100xf32>
    %22 = arith.mulf %21, %14 : vector<1x100xf32>
    %cst_3 = arith.constant 1.73205078 : f32
    %23 = vector.broadcast %cst_3 : f32 to vector<1x100xf32>
    %24 = arith.mulf %23, %12 : vector<1x100xf32>
    %25 = arith.mulf %24, %13 : vector<1x100xf32>
    %cst_4 = arith.constant 5.000000e-01 : f32
    %26 = vector.broadcast %cst_4 : f32 to vector<1x100xf32>
    %27 = arith.mulf %26, %18 : vector<1x100xf32>
    %28 = arith.subf %15, %27 : vector<1x100xf32>
    %cst_5 = arith.constant 1.73205078 : f32
    %29 = vector.broadcast %cst_5 : f32 to vector<1x100xf32>
    %30 = arith.mulf %29, %13 : vector<1x100xf32>
    %31 = arith.mulf %30, %14 : vector<1x100xf32>
    %32 = arith.mulf %14, %14 : vector<1x100xf32>
    %33 = arith.mulf %12, %12 : vector<1x100xf32>
    %34 = arith.subf %32, %33 : vector<1x100xf32>
    %cst_6 = arith.constant 0.866025388 : f32
    %35 = vector.broadcast %cst_6 : f32 to vector<1x100xf32>
    %36 = arith.mulf %35, %34 : vector<1x100xf32>
    %37 = arith.mulf %22, %14 : vector<1x100xf32>
    %38 = arith.mulf %36, %12 : vector<1x100xf32>
    %39 = arith.addf %37, %38 : vector<1x100xf32>
    %cst_7 = arith.constant 0.912870943 : f32
    %40 = vector.broadcast %cst_7 : f32 to vector<1x100xf32>
    %41 = arith.mulf %40, %39 : vector<1x100xf32>
    %cst_8 = arith.constant 2.23606801 : f32
    %42 = vector.broadcast %cst_8 : f32 to vector<1x100xf32>
    %43 = arith.mulf %42, %22 : vector<1x100xf32>
    %44 = arith.mulf %43, %13 : vector<1x100xf32>
    %cst_9 = arith.constant 4.000000e+00 : f32
    %45 = vector.broadcast %cst_9 : f32 to vector<1x100xf32>
    %46 = arith.mulf %45, %15 : vector<1x100xf32>
    %47 = arith.subf %46, %18 : vector<1x100xf32>
    %cst_10 = arith.constant 0.612372457 : f32
    %48 = vector.broadcast %cst_10 : f32 to vector<1x100xf32>
    %49 = arith.mulf %48, %47 : vector<1x100xf32>
    %50 = arith.mulf %49, %12 : vector<1x100xf32>
    %cst_11 = arith.constant 5.000000e-01 : f32
    %51 = vector.broadcast %cst_11 : f32 to vector<1x100xf32>
    %52 = arith.mulf %51, %13 : vector<1x100xf32>
    %cst_12 = arith.constant 2.000000e+00 : f32
    %53 = vector.broadcast %cst_12 : f32 to vector<1x100xf32>
    %54 = arith.mulf %53, %15 : vector<1x100xf32>
    %cst_13 = arith.constant 3.000000e+00 : f32
    %55 = vector.broadcast %cst_13 : f32 to vector<1x100xf32>
    %56 = arith.mulf %55, %18 : vector<1x100xf32>
    %57 = arith.subf %54, %56 : vector<1x100xf32>
    %58 = arith.mulf %52, %57 : vector<1x100xf32>
    %cst_14 = arith.constant 0.612372457 : f32
    %59 = vector.broadcast %cst_14 : f32 to vector<1x100xf32>
    %60 = arith.mulf %59, %14 : vector<1x100xf32>
    %cst_15 = arith.constant 4.000000e+00 : f32
    %61 = vector.broadcast %cst_15 : f32 to vector<1x100xf32>
    %62 = arith.mulf %61, %15 : vector<1x100xf32>
    %63 = arith.subf %62, %18 : vector<1x100xf32>
    %64 = arith.mulf %60, %63 : vector<1x100xf32>
    %cst_16 = arith.constant 2.23606801 : f32
    %65 = vector.broadcast %cst_16 : f32 to vector<1x100xf32>
    %66 = arith.mulf %65, %36 : vector<1x100xf32>
    %67 = arith.mulf %66, %13 : vector<1x100xf32>
    %68 = arith.mulf %36, %14 : vector<1x100xf32>
    %69 = arith.mulf %22, %12 : vector<1x100xf32>
    %70 = arith.subf %68, %69 : vector<1x100xf32>
    %cst_17 = arith.constant 0.912870943 : f32
    %71 = vector.broadcast %cst_17 : f32 to vector<1x100xf32>
    %72 = arith.mulf %71, %70 : vector<1x100xf32>
    %cst_18 = arith.constant 1.000000e+00 : f32
    %73 = vector.broadcast %cst_18 : f32 to vector<1x100xf32>
    %74 = arith.mulf %73, %19 : vector<1x100xf32>
    %cst_19 = arith.constant 1.73205078 : f32
    %75 = vector.broadcast %cst_19 : f32 to vector<1x100xf32>
    %76 = arith.mulf %75, %12 : vector<1x100xf32>
    %cst_20 = arith.constant 1.73205078 : f32
    %77 = vector.broadcast %cst_20 : f32 to vector<1x100xf32>
    %78 = arith.mulf %77, %13 : vector<1x100xf32>
    %cst_21 = arith.constant 1.73205078 : f32
    %79 = vector.broadcast %cst_21 : f32 to vector<1x100xf32>
    %80 = arith.mulf %79, %14 : vector<1x100xf32>
    %cst_22 = arith.constant 2.23606801 : f32
    %81 = vector.broadcast %cst_22 : f32 to vector<1x100xf32>
    %82 = arith.mulf %81, %22 : vector<1x100xf32>
    %cst_23 = arith.constant 2.23606801 : f32
    %83 = vector.broadcast %cst_23 : f32 to vector<1x100xf32>
    %84 = arith.mulf %83, %25 : vector<1x100xf32>
    %cst_24 = arith.constant 2.23606801 : f32
    %85 = vector.broadcast %cst_24 : f32 to vector<1x100xf32>
    %86 = arith.mulf %85, %28 : vector<1x100xf32>
    %cst_25 = arith.constant 2.23606801 : f32
    %87 = vector.broadcast %cst_25 : f32 to vector<1x100xf32>
    %88 = arith.mulf %87, %31 : vector<1x100xf32>
    %cst_26 = arith.constant 2.23606801 : f32
    %89 = vector.broadcast %cst_26 : f32 to vector<1x100xf32>
    %90 = arith.mulf %89, %36 : vector<1x100xf32>
    %cst_27 = arith.constant 2.64575124 : f32
    %91 = vector.broadcast %cst_27 : f32 to vector<1x100xf32>
    %92 = arith.mulf %91, %41 : vector<1x100xf32>
    %cst_28 = arith.constant 2.64575124 : f32
    %93 = vector.broadcast %cst_28 : f32 to vector<1x100xf32>
    %94 = arith.mulf %93, %44 : vector<1x100xf32>
    %cst_29 = arith.constant 2.64575124 : f32
    %95 = vector.broadcast %cst_29 : f32 to vector<1x100xf32>
    %96 = arith.mulf %95, %50 : vector<1x100xf32>
    %cst_30 = arith.constant 2.64575124 : f32
    %97 = vector.broadcast %cst_30 : f32 to vector<1x100xf32>
    %98 = arith.mulf %97, %58 : vector<1x100xf32>
    %cst_31 = arith.constant 2.64575124 : f32
    %99 = vector.broadcast %cst_31 : f32 to vector<1x100xf32>
    %100 = arith.mulf %99, %64 : vector<1x100xf32>
    %cst_32 = arith.constant 2.64575124 : f32
    %101 = vector.broadcast %cst_32 : f32 to vector<1x100xf32>
    %102 = arith.mulf %101, %67 : vector<1x100xf32>
    %cst_33 = arith.constant 2.64575124 : f32
    %103 = vector.broadcast %cst_33 : f32 to vector<1x100xf32>
    %104 = arith.mulf %103, %72 : vector<1x100xf32>
    %c0_34 = arith.constant 0 : index
    %c0_35 = arith.constant 0 : index
    %105 = vector.load %arg2[%c0_34, %c0_35] : memref<16x100xf32, #tpu.memory_space<vmem>>, vector<1x100xf32>
    tpu.vector_store %arg2[%c0_34, %c0_35], %74 {strides = array<i32>} : memref<16x100xf32, #tpu.memory_space<vmem>>, vector<1x100xf32>,
    %c1 = arith.constant 1 : index
    %c0_36 = arith.constant 0 : index
    %106 = vector.load %arg2[%c1, %c0_36] : memref<16x100xf32, #tpu.memory_space<vmem>>, vector<1x100xf32>
    tpu.vector_store %arg2[%c1, %c0_36], %76 {strides = array<i32>} : memref<16x100xf32, #tpu.memory_space<vmem>>, vector<1x100xf32>,
    %c2 = arith.constant 2 : index
    %c0_37 = arith.constant 0 : index
    %107 = vector.load %arg2[%c2, %c0_37] : memref<16x100xf32, #tpu.memory_space<vmem>>, vector<1x100xf32>
    tpu.vector_store %arg2[%c2, %c0_37], %78 {strides = array<i32>} : memref<16x100xf32, #tpu.memory_space<vmem>>, vector<1x100xf32>,
    %c3 = arith.constant 3 : index
    %c0_38 = arith.constant 0 : index
    %108 = vector.load %arg2[%c3, %c0_38] : memref<16x100xf32, #tpu.memory_space<vmem>>, vector<1x100xf32>
    tpu.vector_store %arg2[%c3, %c0_38], %80 {strides = array<i32>} : memref<16x100xf32, #tpu.memory_space<vmem>>, vector<1x100xf32>,
    %c4 = arith.constant 4 : index
    %c0_39 = arith.constant 0 : index
    %109 = vector.load %arg2[%c4, %c0_39] : memref<16x100xf32, #tpu.memory_space<vmem>>, vector<1x100xf32>
    tpu.vector_store %arg2[%c4, %c0_39], %82 {strides = array<i32>} : memref<16x100xf32, #tpu.memory_space<vmem>>, vector<1x100xf32>,
    %c5 = arith.constant 5 : index
    %c0_40 = arith.constant 0 : index
    %110 = vector.load %arg2[%c5, %c0_40] : memref<16x100xf32, #tpu.memory_space<vmem>>, vector<1x100xf32>
    tpu.vector_store %arg2[%c5, %c0_40], %84 {strides = array<i32>} : memref<16x100xf32, #tpu.memory_space<vmem>>, vector<1x100xf32>,
    %c6 = arith.constant 6 : index
    %c0_41 = arith.constant 0 : index
    %111 = vector.load %arg2[%c6, %c0_41] : memref<16x100xf32, #tpu.memory_space<vmem>>, vector<1x100xf32>
    tpu.vector_store %arg2[%c6, %c0_41], %86 {strides = array<i32>} : memref<16x100xf32, #tpu.memory_space<vmem>>, vector<1x100xf32>,
    %c7 = arith.constant 7 : index
    %c0_42 = arith.constant 0 : index
    %112 = vector.load %arg2[%c7, %c0_42] : memref<16x100xf32, #tpu.memory_space<vmem>>, vector<1x100xf32>
    tpu.vector_store %arg2[%c7, %c0_42], %88 {strides = array<i32>} : memref<16x100xf32, #tpu.memory_space<vmem>>, vector<1x100xf32>,
    %c8 = arith.constant 8 : index
    %c0_43 = arith.constant 0 : index
    %113 = vector.load %arg2[%c8, %c0_43] : memref<16x100xf32, #tpu.memory_space<vmem>>, vector<1x100xf32>
    tpu.vector_store %arg2[%c8, %c0_43], %90 {strides = array<i32>} : memref<16x100xf32, #tpu.memory_space<vmem>>, vector<1x100xf32>,
    %c9 = arith.constant 9 : index
    %c0_44 = arith.constant 0 : index
    %114 = vector.load %arg2[%c9, %c0_44] : memref<16x100xf32, #tpu.memory_space<vmem>>, vector<1x100xf32>
    tpu.vector_store %arg2[%c9, %c0_44], %92 {strides = array<i32>} : memref<16x100xf32, #tpu.memory_space<vmem>>, vector<1x100xf32>,
    %c10 = arith.constant 10 : index
    %c0_45 = arith.constant 0 : index
    %115 = vector.load %arg2[%c10, %c0_45] : memref<16x100xf32, #tpu.memory_space<vmem>>, vector<1x100xf32>
    tpu.vector_store %arg2[%c10, %c0_45], %94 {strides = array<i32>} : memref<16x100xf32, #tpu.memory_space<vmem>>, vector<1x100xf32>,
    %c11 = arith.constant 11 : index
    %c0_46 = arith.constant 0 : index
    %116 = vector.load %arg2[%c11, %c0_46] : memref<16x100xf32, #tpu.memory_space<vmem>>, vector<1x100xf32>
    tpu.vector_store %arg2[%c11, %c0_46], %96 {strides = array<i32>} : memref<16x100xf32, #tpu.memory_space<vmem>>, vector<1x100xf32>,
    %c12 = arith.constant 12 : index
    %c0_47 = arith.constant 0 : index
    %117 = vector.load %arg2[%c12, %c0_47] : memref<16x100xf32, #tpu.memory_space<vmem>>, vector<1x100xf32>
    tpu.vector_store %arg2[%c12, %c0_47], %98 {strides = array<i32>} : memref<16x100xf32, #tpu.memory_space<vmem>>, vector<1x100xf32>,
    %c13 = arith.constant 13 : index
    %c0_48 = arith.constant 0 : index
    %118 = vector.load %arg2[%c13, %c0_48] : memref<16x100xf32, #tpu.memory_space<vmem>>, vector<1x100xf32>
    tpu.vector_store %arg2[%c13, %c0_48], %100 {strides = array<i32>} : memref<16x100xf32, #tpu.memory_space<vmem>>, vector<1x100xf32>,
    %c14 = arith.constant 14 : index
    %c0_49 = arith.constant 0 : index
    %119 = vector.load %arg2[%c14, %c0_49] : memref<16x100xf32, #tpu.memory_space<vmem>>, vector<1x100xf32>
    tpu.vector_store %arg2[%c14, %c0_49], %102 {strides = array<i32>} : memref<16x100xf32, #tpu.memory_space<vmem>>, vector<1x100xf32>,
    %c15 = arith.constant 15 : index
    %c0_50 = arith.constant 0 : index
    %120 = vector.load %arg2[%c15, %c0_50] : memref<16x100xf32, #tpu.memory_space<vmem>>, vector<1x100xf32>
    tpu.vector_store %arg2[%c15, %c0_50], %104 {strides = array<i32>} : memref<16x100xf32, #tpu.memory_space<vmem>>, vector<1x100xf32>,
    return
  }
  func.func @transform_0(%arg0: i32) -> (i32, i32) {
    %c0_i32 = arith.constant 0 : i32
    %c0_i32_0 = arith.constant 0 : i32
    return %c0_i32, %arg0 : i32, i32
  }
  func.func @transform_1(%arg0: i32) -> (i32, i32) {
    %c0_i32 = arith.constant 0 : i32
    %c0_i32_0 = arith.constant 0 : i32
    return %c0_i32, %arg0 : i32, i32
  }
}

</mosaic_0001>

<bundles_post_ra>
// kernel: tpu_custom_call.1
= control target key start
LH: loop header
LB: loop body
LE: loop exit
PB: predicated region body
PF: predicated region fallthrough
CT: control target
= control target key end

     0   :  { %6 = vsyncpa [#allocation3], 0  ;;  %s258_s0 = inlined_call_operand.hbm [shape: f32[3,100], index: 0, kind: input, shape index: {}]   ;;  %s259_s1 = inlined_call_operand.hbm [shape: f32[16,100], index: 1, kind: output, shape index: {}]  }
   0x1   :  { %7 = vsyncpa [#allocation4], 0  ;;  %s213_s6 = smov [#allocation2]  }
   0x2   :  { %s14_s7 = sshll.u32 %s213_s6, 4  ;;  %s15_s7 = int_to_ptr.vmem [resolvable:$true] %s14_s7 }
   0x3   :  { %s177_s8 = scalar_lea.vmem %s15_s7, 64  ;;  %p182_p1 = scmp.lt.s32.totalorder %s15_s7, %s15_s7 }
   0x4   :  { %p178_p0 = scmp.ne.s32.totalorder %s15_s7, %s177_s8  ;;  %p183_p2 = scmp.lt.s32.totalorder %s177_s8, %s177_s8 }
   0x6   :  { %p184_p3 = por %p183_p2, %p182_p1 }
   0x8   :  { %p185_p4 = pnand %p184_p3, %p178_p0 }
   0xa   :  { %188 = shalt.err (!%p185_p4)
}
   0xb   :  { %17 = dma.hbm_to_vmem [thread:$0]  %s258_s0, 64, %s15_s7, [#allocation3]  }
   0xc   :  { %209 = dma.done.wait [#allocation3], 64  }
   0xd   :  { %210 = vsyncadd [#allocation3], 4294967232  ;;  %vm126_vm0 = vcmask 811008   ;;  %v214_v0 = vmov 1.0   ;;  %v21_v1 = vld [vmem:[#allocation2] sm:$0x7] }
   0xe   :  { %127 = vst.msk [vmem:[#allocation5] sm:$0x1] %vm126_vm0, %v214_v0  ;;  %v22_v2 = vmul.f32 %v21_v1, %v21_v1  ;;  %vm129_vm1 = vcmask 812033   ;;  %vm131_vm2 = vcmask 813058   ;;  %s215_s0 = smov [#allocation5]  }
   0xf   :  { %s150_s11 = sshll.u32 %s215_s0, 4  ;;  %s151_s11 = int_to_ptr.vmem [resolvable:$true] %s150_s11 }
  0x10   :  { %v24_v3 = vrot.slane %v22_v2, 1  ;;  %v27_v4 = vrot.slane %v22_v2, 2  ;;  %s189_s12 = scalar_lea.vmem %s151_s11, 256  ;;  %p194_p6 = scmp.lt.s32.totalorder %s151_s11, %s151_s11 }
  0x11   :  { %p190_p5 = scmp.ne.s32.totalorder %s151_s11, %s189_s12  ;;  %p195_p7 = scmp.lt.s32.totalorder %s189_s12, %s189_s12 }
  0x12   :  { %v26_v5 = vadd.f32 %v24_v3, %v22_v2 }
  0x13   :  { %p196_p8 = por %p195_p7, %p194_p6 }
  0x14   :  { %v29_v6 = vadd.f32 %v27_v4, %v26_v5 }
  0x15   :  { %p197_p9 = pnand %p196_p8, %p190_p5 }
  0x16   :  { %v30_v7 = vmax.f32 %v29_v6, 1e-24 }
  0x18   :  { %167 = vrsqrt.f32 %v30_v7 }
  0x25   :  { %v168_v8 = vpop.eup %167 }
  0x26   :  { %v232_v9 = vmul.f32 %v168_v8, %v21_v1  ;;  %v34_v10 = vrot.slane %v168_v8, 7  ;;  %v37_v11 = vrot.slane %v168_v8, 6 }
  0x28   :  { %v47_v12 = vmul.f32 1.7320508, %v232_v9  ;;  %v36_v13 = vmul.f32 %v34_v10, %v21_v1  ;;  %v39_v14 = vmul.f32 %v37_v11, %v21_v1  ;;  %v41_v15 = vmul.f32 %v232_v9, %v232_v9 }
  0x29   :  { %v72_v26 = vrot.slane %v232_v9, 6  ;;  %v88_v34 = vrot.slane %v232_v9, 7 }
  0x2a   :  { %128 = vst.msk [vmem:[#allocation5 + $0x1] sm:$0x1] %vm126_vm0, %v47_v12  ;;  %v61_v16 = vmul.f32 1.7320508, %v36_v13  ;;  %v115_v17 = vmul.f32 1.7320508, %v39_v14  ;;  %v40_v20 = vmul.f32 %v36_v13, %v36_v13  ;;  %v42_v21 = vmul.f32 %v39_v14, %v39_v14 }
  0x2b   :  { %v49_v18 = vrot.slane %v39_v14, 2  ;;  %v53_v19 = vrot.slane %v36_v13, 1  ;;  %v62_v22 = vrot.slane %v39_v14, 1  ;;  %v66_v23 = vrot.slane %v41_v15, 6 }
  0x2c   :  { %130 = vst.msk [vmem:[#allocation5 + $0x1] sm:$0x2] %vm129_vm1, %v61_v16  ;;  %v44_v27 = vrot.slane %v42_v21, 2  ;;  %v99_v30 = vmul.f32 0.61237246, %v39_v14  ;;  %v82_v33 = vmul.f32 4.0, %v40_v20 }
  0x2d   :  { %132 = vst.msk [vmem:[#allocation5 + $0x1] sm:$0x4] %vm131_vm2, %v115_v17  ;;  %v51_v24 = vmul.f32 %v49_v18, %v47_v12  ;;  %v55_v25 = vmul.f32 %v53_v19, %v47_v12  ;;  %v64_v28 = vmul.f32 %v62_v22, %v61_v16  ;;  %v68_v29 = vsub.f32 %v42_v21, %v66_v23 }
  0x2e   :  { %v46_v35 = vadd.f32 %v44_v27, %v41_v15  ;;  %v105_v38 = vrot.slane %v36_v13, 7  ;;  %v92_v41 = vmul.f32 2.0, %v40_v20  ;;  %v91_v55 = vmul.f32 0.5, %v36_v13 }
  0x2f   :  { %v80_v31 = vmul.f32 2.236068, %v51_v24  ;;  %v116_v32 = vmul.f32 2.236068, %v55_v25  ;;  %v118_v36 = vmul.f32 2.236068, %v64_v28  ;;  %v70_v39 = vmul.f32 %v51_v24, %v49_v18 }
  0x30   :  { %v69_v37 = vmul.f32 0.8660254, %v68_v29  ;;  %v109_v42 = vmul.f32 %v51_v24, %v232_v9  ;;  %v56_v43 = vmul.f32 0.5, %v46_v35  ;;  %v84_v46 = vrot.slane %v46_v35, 7 }
  0x31   :  { %133 = vst.msk [vmem:[#allocation5 + $0x4] sm:$0x1] %vm126_vm0, %v80_v31  ;;  %134 = vst.msk [vmem:[#allocation5 + $0x5] sm:$0x1] %vm126_vm0, %v116_v32  ;;  %v81_v40 = vmul.f32 %v80_v31, %v53_v19  ;;  %v93_v48 = vmul.f32 3.0, %v46_v35 }
  0x32   :  { %136 = vst.msk [vmem:[#allocation5 + $0x6] sm:$0x2] %vm129_vm1, %v118_v36  ;;  %v104_v44 = vmul.f32 2.236068, %v69_v37  ;;  %v74_v45 = vmul.f32 %v72_v26, %v69_v37  ;;  %v108_v49 = vmul.f32 %v69_v37, %v39_v14  ;;  %v111_v50 = vrot.slane %v109_v42, 6 }
  0x33   :  { %v120_v47 = vmul.f32 2.6457512, %v81_v40  ;;  %v58_v51 = vrot.slane %v56_v43, 7  ;;  %v86_v53 = vsub.f32 %v82_v33, %v84_v46  ;;  %v95_v56 = vrot.slane %v93_v48, 7 }
  0x34   :  { %137 = vst.msk [vmem:[#allocation5 + $0x6] sm:$0x4] %vm131_vm2, %v104_v44  ;;  %v76_v52 = vrot.slane %v74_v45, 2  ;;  %v107_v54 = vmul.f32 %v105_v38, %v104_v44  ;;  %v113_v57 = vsub.f32 %v108_v49, %v111_v50 }
  0x35   :  { %139 = vst.msk [vmem:[#allocation5 + $0xa] sm:$0x1] %vm126_vm0, %v120_v47  ;;  %v60_v58 = vsub.f32 %v40_v20, %v58_v51  ;;  %v87_v60 = vmul.f32 0.61237246, %v86_v53  ;;  %v101_v61 = vrot.slane %v86_v53, 7  ;;  %v97_v62 = vsub.f32 %v92_v41, %v95_v56 }
  0x36   :  { %v78_v59 = vadd.f32 %v76_v52, %v70_v39  ;;  %v124_v63 = vmul.f32 2.6457512, %v107_v54  ;;  %v114_v0 = vmul.f32 0.91287094, %v113_v57 }
  0x37   :  { %v117_v1 = vmul.f32 2.236068, %v60_v58  ;;  %v90_v3 = vmul.f32 %v88_v34, %v87_v60  ;;  %v103_v4 = vmul.f32 %v101_v61, %v99_v30  ;;  %v98_v5 = vmul.f32 %v97_v62, %v91_v55 }
  0x38   :  { %v79_v2 = vmul.f32 0.91287094, %v78_v59  ;;  %143 = vst.msk [vmem:[#allocation5 + $0xc] sm:$0x4] %vm131_vm2, %v124_v63  ;;  %v125_v6 = vmul.f32 2.6457512, %v114_v0 }
  0x39   :  { %135 = vst.msk [vmem:[#allocation5 + $0x5] sm:$0x2] %vm129_vm1, %v117_v1  ;;  %v121_v8 = vmul.f32 2.6457512, %v90_v3  ;;  %v123_v9 = vmul.f32 2.6457512, %v103_v4 }
  0x3a   :  { %v119_v7 = vmul.f32 2.6457512, %v79_v2  ;;  %v122_v10 = vmul.f32 2.6457512, %v98_v5  ;;  %144 = vst.msk [vmem:[#allocation5 + $0xd] sm:$0x4] %vm131_vm2, %v125_v6 }
  0x3b   :  { %140 = vst.msk [vmem:[#allocation5 + $0xa] sm:$0x2] %vm129_vm1, %v121_v8 }
  0x3c   :  { %138 = vst.msk [vmem:[#allocation5 + $0x9] sm:$0x1] %vm126_vm0, %v119_v7 }
  0x3d   :  { %142 = vst.msk [vmem:[#allocation5 + $0xb] sm:$0x4] %vm131_vm2, %v123_v9 }
  0x3e   :  { %141 = vst.msk [vmem:[#allocation5 + $0xb] sm:$0x2] %vm129_vm1, %v122_v10 }
  0x3f   :  { %200 = shalt.err (!%p197_p9)
}
  0x40   :  { %s216_s13 = smov 128   ;;  %s217_s14 = smov 8  }
  0x41   :  { %156 = dma.vmem_to_hbm [thread:$0]  %s151_s11, 256, %s259_s1, [#allocation4], %s216_s13, %s216_s13, %s217_s14  }
  0x42   :  { %211 = dma.done.wait [#allocation4], 256  }
  0x43   :  { %212 = vsyncadd [#allocation4], 4294967040 }
  0x44   :  { %160 = vsyncpa [#allocation3], 1 }
  0x45   :  { %161 = vsyncpa [#allocation4], 1 }

</bundles_post_ra>
